<compile_context>
chip_gen: v7x
topology: tpu7x:2x2x1
jax: 0.10.0
libtpu: 0.0.40
codegen_flags: <defaults>
</compile_context>

<pallas_src>
import functools

import jax
import jax.numpy as jnp
from jax.experimental import pallas as pl
from jax.experimental.pallas import tpu as pltpu


def _round_up(x, m):
    return ((x + m - 1) // m) * m


def _ffn_kernel(alpha_ref, x_ref, w1_ref, b1_ref, w2_ref, b2_ref, o_ref, h_ref):
    # x_ref:  (TM, Dm_p)    bf16 input row tile
    # w1_ref: (Dm_p, Dff_p) bf16, resident across the grid
    # b1_ref: (1, Dff_p)    f32
    # w2_ref: (Dff_p, TN)   bf16 column tile of W2
    # b2_ref: (1, TN)       f32
    # o_ref:  (TM, TN)      output tile
    # h_ref:  (TM, Dff_p)   bf16 VMEM scratch (PReLU output, cached across j)
    # alpha_ref: (1, 1)     SMEM PReLU slope (single shared parameter)

    # Compute the hidden activation only once per row tile (j == 0),
    # then reuse it for every output-column tile of the same row tile.
    @pl.when(pl.program_id(1) == 0)
    def _():
        h = jnp.dot(x_ref[...], w1_ref[...], preferred_element_type=jnp.float32)
        h = h + b1_ref[...]                       # f32 bias add
        a = alpha_ref[0, 0]
        h = jnp.where(h > 0, h, a * h)            # PReLU
        # dropout: identity (eval mode)
        h_ref[...] = h.astype(h_ref.dtype)        # bf16 for the 2nd MXU matmul

    o = jnp.dot(h_ref[...], w2_ref[...], preferred_element_type=jnp.float32)
    o = o + b2_ref[...]
    o_ref[...] = o.astype(o_ref.dtype)


@functools.partial(jax.jit, static_argnames=("tile_m", "tile_n", "compute_dtype"))
def positionwise_feed_forward(x, w1, b1, w2, b2, alpha, *,
                              tile_m=256, tile_n=512,
                              compute_dtype=jnp.bfloat16):
    """x: (..., d_model) -> (..., d_out).  w1:(d_model,d_ff), w2:(d_ff,d_out)."""
    orig_shape = x.shape
    d_model = orig_shape[-1]
    d_ff = w1.shape[1]
    d_out = w2.shape[1]
    out_dtype = x.dtype

    rows = 1
    for s in orig_shape[:-1]:
        rows *= s

    # --- row tiling: clamp tile_m for tiny inputs, pad ragged tail ----------
    tile_m = max(8, min(_round_up(tile_m, 8), _round_up(rows, 8)))
    rows_p = _round_up(rows, tile_m)

    # --- lane-dense feature padding (multiples of 128) -----------------------
    d_model_p = _round_up(d_model, 128)
    d_ff_p = _round_up(d_ff, 128)
    tile_n = max(128, min(_round_up(tile_n, 128), _round_up(d_out, 128)))
    d_out_p = _round_up(d_out, tile_n)

    # --- pad + cast operands (zero padding keeps the math exact) -------------
    x2d = x.reshape(rows, d_model)
    x_p = jnp.pad(x2d, ((0, rows_p - rows), (0, d_model_p - d_model)))
    x_p = x_p.astype(compute_dtype)
    w1_p = jnp.pad(w1, ((0, d_model_p - d_model), (0, d_ff_p - d_ff))).astype(compute_dtype)
    w2_p = jnp.pad(w2, ((0, d_ff_p - d_ff), (0, d_out_p - d_out))).astype(compute_dtype)
    b1_p = jnp.pad(b1, (0, d_ff_p - d_ff)).reshape(1, d_ff_p).astype(jnp.float32)
    b2_p = jnp.pad(b2, (0, d_out_p - d_out)).reshape(1, d_out_p).astype(jnp.float32)
    alpha_arr = jnp.asarray(alpha, jnp.float32).reshape(1, 1)

    grid = (rows_p // tile_m, d_out_p // tile_n)

    # --- explicit VMEM budget (double-buffer counted, + slack) ---------------
    cb = jnp.dtype(compute_dtype).itemsize
    ob = jnp.dtype(out_dtype).itemsize
    footprint = (
        2 * tile_m * d_model_p * cb        # x tile (double buffered)
        + 2 * d_model_p * d_ff_p * cb      # W1 resident
        + 2 * d_ff_p * 4                   # b1
        + 2 * d_ff_p * tile_n * cb         # W2 column tile (double buffered)
        + 2 * tile_n * 4                   # b2
        + 2 * tile_m * tile_n * ob         # out tile (double buffered)
        + tile_m * d_ff_p * cb             # h scratch
    )
    vmem_limit = min(max(int(footprint * 1.5) + (4 << 20), 32 << 20), 120 << 20)

    out_p = pl.pallas_call(
        _ffn_kernel,
        out_shape=jax.ShapeDtypeStruct((rows_p, d_out_p), out_dtype),
        grid=grid,
        in_specs=[
            pl.BlockSpec(memory_space=pltpu.MemorySpace.SMEM),              # alpha
            pl.BlockSpec((tile_m, d_model_p), lambda i, j: (i, 0)),         # x row tile
            pl.BlockSpec((d_model_p, d_ff_p), lambda i, j: (0, 0)),         # W1 (resident)
            pl.BlockSpec((1, d_ff_p), lambda i, j: (0, 0)),                 # b1
            pl.BlockSpec((d_ff_p, tile_n), lambda i, j: (0, j)),            # W2 column tile
            pl.BlockSpec((1, tile_n), lambda i, j: (0, j)),                 # b2
        ],
        out_specs=pl.BlockSpec((tile_m, tile_n), lambda i, j: (i, j)),
        scratch_shapes=[pltpu.VMEM((tile_m, d_ff_p), compute_dtype)],       # cached PReLU(h)
        compiler_params=pltpu.CompilerParams(
            dimension_semantics=("parallel", "arbitrary"),
            vmem_limit_bytes=vmem_limit,
        ),
    )(alpha_arr, x_p, w1_p, b1_p, w2_p, b2_p)

    out2d = out_p[:rows, :d_out]
    return out2d.reshape(orig_shape[:-1] + (d_out,))


def init_params(key, d_model, d_ff, d_out):
    """Deterministic init mirroring the module shapes (xavier-normal weights)."""
    k1, k2, k3, k4 = jax.random.split(key, 4)
    std1 = (2.0 / (d_model + d_ff)) ** 0.5
    std2 = (2.0 / (d_ff + d_out)) ** 0.5
    # stored transposed vs. torch: (in_features, out_features)
    w1 = std1 * jax.random.normal(k1, (d_model, d_ff), jnp.float32)
    w2 = std2 * jax.random.normal(k2, (d_ff, d_out), jnp.float32)
    bound1 = 1.0 / (d_model ** 0.5)
    bound2 = 1.0 / (d_ff ** 0.5)
    b1 = jax.random.uniform(k3, (d_ff,), jnp.float32, -bound1, bound1)
    b2 = jax.random.uniform(k4, (d_out,), jnp.float32, -bound2, bound2)
    alpha = jnp.float32(0.25)  # nn.PReLU default init
    return w1, b1, w2, b2, alpha


if __name__ == "__main__":
    key = jax.random.PRNGKey(0)
    kx, kp = jax.random.split(key)

    batch, seq, d_model, d_ff = 2, 8, 32, 64
    d_out = d_model

    x = jax.random.normal(kx, (batch, seq, d_model), jnp.float32)
    w1, b1, w2, b2, alpha = init_params(kp, d_model, d_ff, d_out)

    out = positionwise_feed_forward(x, w1, b1, w2, b2, alpha)
    out = jax.block_until_ready(out)

    # reference check in plain JAX using the same bf16-input / f32-accum math
    # (eval-mode dropout == identity)
    xb = x.astype(jnp.bfloat16)
    w1b = w1.astype(jnp.bfloat16)
    w2b = w2.astype(jnp.bfloat16)
    h_ref = jnp.dot(xb, w1b, preferred_element_type=jnp.float32) + b1
    h_ref = jnp.where(h_ref > 0, h_ref, alpha * h_ref)
    ref = jnp.dot(h_ref.astype(jnp.bfloat16), w2b, preferred_element_type=jnp.float32) + b2

    assert out.shape == (batch, seq, d_out)
    assert jnp.allclose(out, ref, atol=1e-2, rtol=1e-2), (
        float(jnp.max(jnp.abs(out - ref))))

    print("KERNEL_OK")
</pallas_src>

<mosaic_0001>
module attributes {stable_mosaic.version = 11 : i64} {
  func.func @_ffn_kernel(%arg0: i32, %arg1: i32, %arg2: memref<1x1xf32, #tpu.memory_space<smem>>, %arg3: memref<16x128xbf16, #tpu.memory_space<vmem>>, %arg4: memref<128x128xbf16, #tpu.memory_space<vmem>>, %arg5: memref<1x128xf32, #tpu.memory_space<vmem>>, %arg6: memref<128x128xbf16, #tpu.memory_space<vmem>>, %arg7: memref<1x128xf32, #tpu.memory_space<vmem>>, %arg8: memref<16x128xf32, #tpu.memory_space<vmem>>, %arg9: memref<16x128xbf16, #tpu.memory_space<vmem>>) attributes {dimension_semantics = [#tpu.dimension_semantics<parallel>, #tpu.dimension_semantics<arbitrary>], iteration_bounds = array<i64: 1, 1>, scalar_prefetch = 0 : i64, scratch_operands = 1 : i64, tpu.core_type = #tpu.core_type<tc>, window_params = [{transform_indices = @transform_0, window_bounds = array<i64: 1, 1>}, {transform_indices = @transform_1, window_bounds = array<i64: 16, 128>}, {pipeline_mode = #tpu.pipeline_mode<synchronous>, transform_indices = @transform_2, window_bounds = array<i64: 128, 128>}, {pipeline_mode = #tpu.pipeline_mode<synchronous>, transform_indices = @transform_3, window_bounds = array<i64: 1, 128>}, {transform_indices = @transform_4, window_bounds = array<i64: 128, 128>}, {transform_indices = @transform_5, window_bounds = array<i64: 1, 128>}, {transform_indices = @transform_6, window_bounds = array<i64: 16, 128>}]} {
    %c0_i32 = arith.constant 0 : i32
    %0 = arith.cmpi eq, %arg1, %c0_i32 : i32
    %1 = arith.extui %0 : i1 to i32
    %c0_i32_0 = arith.constant 0 : i32
    %2 = arith.cmpi ne, %1, %c0_i32_0 : i32
    scf.if %2 {
      %c0_8 = arith.constant 0 : index
      %c0_9 = arith.constant 0 : index
      %10 = vector.load %arg3[%c0_8, %c0_9] : memref<16x128xbf16, #tpu.memory_space<vmem>>, vector<16x128xbf16>
      %c0_10 = arith.constant 0 : index
      %c0_11 = arith.constant 0 : index
      %11 = vector.load %arg4[%c0_10, %c0_11] : memref<128x128xbf16, #tpu.memory_space<vmem>>, vector<128x128xbf16>
      %cst_12 = arith.constant dense<0.000000e+00> : vector<16x128xf32>
      %12 = tpu.matmul %10, %11, %cst_12 {dimension_numbers = #tpu.dot_dimension_numbers<[1], [0], [0], [1], [0, 0, 1, 1], [], []>} : vector<16x128xbf16>, vector<128x128xbf16>, vector<16x128xf32> -> vector<16x128xf32>
      %c0_13 = arith.constant 0 : index
      %c0_14 = arith.constant 0 : index
      %13 = vector.load %arg5[%c0_13, %c0_14] : memref<1x128xf32, #tpu.memory_space<vmem>>, vector<1x128xf32>
      %14 = vector.broadcast %13 : vector<1x128xf32> to vector<16x128xf32>
      %15 = arith.addf %12, %14 : vector<16x128xf32>
      %c0_15 = arith.constant 0 : index
      %c0_16 = arith.constant 0 : index
      %16 = memref.load %arg2[%c0_15, %c0_16] : memref<1x1xf32, #tpu.memory_space<smem>>
      %cst_17 = arith.constant 0.000000e+00 : f32
      %17 = vector.broadcast %cst_17 : f32 to vector<16x128xf32>
      %18 = arith.cmpf ogt, %15, %17 : vector<16x128xf32>
      %19 = vector.broadcast %16 : f32 to vector<16x128xf32>
      %20 = arith.mulf %19, %15 : vector<16x128xf32>
      %21 = arith.select %18, %15, %20 : vector<16x128xi1>, vector<16x128xf32>
      %22 = arith.truncf %21 : vector<16x128xf32> to vector<16x128xbf16>
      %c0_18 = arith.constant 0 : index
      %c0_19 = arith.constant 0 : index
      %23 = vector.load %arg9[%c0_18, %c0_19] : memref<16x128xbf16, #tpu.memory_space<vmem>>, vector<16x128xbf16>
      tpu.vector_store %arg9[%c0_18, %c0_19], %22 {strides = array<i32>} : memref<16x128xbf16, #tpu.memory_space<vmem>>, vector<16x128xbf16>,
    } else {
    }
    %c0 = arith.constant 0 : index
    %c0_1 = arith.constant 0 : index
    %3 = vector.load %arg9[%c0, %c0_1] : memref<16x128xbf16, #tpu.memory_space<vmem>>, vector<16x128xbf16>
    %c0_2 = arith.constant 0 : index
    %c0_3 = arith.constant 0 : index
    %4 = vector.load %arg6[%c0_2, %c0_3] : memref<128x128xbf16, #tpu.memory_space<vmem>>, vector<128x128xbf16>
    %cst = arith.constant dense<0.000000e+00> : vector<16x128xf32>
    %5 = tpu.matmul %3, %4, %cst {dimension_numbers = #tpu.dot_dimension_numbers<[1], [0], [0], [1], [0, 0, 1, 1], [], []>} : vector<16x128xbf16>, vector<128x128xbf16>, vector<16x128xf32> -> vector<16x128xf32>
    %c0_4 = arith.constant 0 : index
    %c0_5 = arith.constant 0 : index
    %6 = vector.load %arg7[%c0_4, %c0_5] : memref<1x128xf32, #tpu.memory_space<vmem>>, vector<1x128xf32>
    %7 = vector.broadcast %6 : vector<1x128xf32> to vector<16x128xf32>
    %8 = arith.addf %5, %7 : vector<16x128xf32>
    %c0_6 = arith.constant 0 : index
    %c0_7 = arith.constant 0 : index
    %9 = vector.load %arg8[%c0_6, %c0_7] : memref<16x128xf32, #tpu.memory_space<vmem>>, vector<16x128xf32>
    tpu.vector_store %arg8[%c0_6, %c0_7], %8 {strides = array<i32>} : memref<16x128xf32, #tpu.memory_space<vmem>>, vector<16x128xf32>,
    return
  }
  func.func @transform_0(%arg0: i32, %arg1: i32) -> (i32, i32) {
    %c0_i32 = arith.constant 0 : i32
    %c0_i32_0 = arith.constant 0 : i32
    %c0_i32_1 = arith.constant 0 : i32
    return %c0_i32, %c0_i32_0 : i32, i32
  }
  func.func @transform_1(%arg0: i32, %arg1: i32) -> (i32, i32) {
    %c0_i32 = arith.constant 0 : i32
    %c0_i32_0 = arith.constant 0 : i32
    return %arg0, %c0_i32 : i32, i32
  }
  func.func @transform_2(%arg0: i32, %arg1: i32) -> (i32, i32) {
    %c0_i32 = arith.constant 0 : i32
    %c0_i32_0 = arith.constant 0 : i32
    %c0_i32_1 = arith.constant 0 : i32
    return %c0_i32, %c0_i32_0 : i32, i32
  }
  func.func @transform_3(%arg0: i32, %arg1: i32) -> (i32, i32) {
    %c0_i32 = arith.constant 0 : i32
    %c0_i32_0 = arith.constant 0 : i32
    %c0_i32_1 = arith.constant 0 : i32
    return %c0_i32, %c0_i32_0 : i32, i32
  }
  func.func @transform_4(%arg0: i32, %arg1: i32) -> (i32, i32) {
    %c0_i32 = arith.constant 0 : i32
    %c0_i32_0 = arith.constant 0 : i32
    return %c0_i32, %arg1 : i32, i32
  }
  func.func @transform_5(%arg0: i32, %arg1: i32) -> (i32, i32) {
    %c0_i32 = arith.constant 0 : i32
    %c0_i32_0 = arith.constant 0 : i32
    return %c0_i32, %arg1 : i32, i32
  }
  func.func @transform_6(%arg0: i32, %arg1: i32) -> (i32, i32) {
    %c0_i32 = arith.constant 0 : i32
    return %arg0, %arg1 : i32, i32
  }
}

</mosaic_0001>

<bundles_post_ra>
// kernel: positionwise_feed_forward.1
= control target key start
LH: loop header
LB: loop body
LE: loop exit
PB: predicated region body
PF: predicated region fallthrough
CT: control target
= control target key end

     0   :  { %v374_v0 = vmov 0.0   ;;  %vm375_vm0 = vmmov 0   ;;  %s477_s2 = inlined_call_operand.vmem [shape: bf16[128,128], index: 2, kind: input, shape index: {}]   ;;  %s478_s4 = inlined_call_operand.vmem [shape: bf16[128,128], index: 4, kind: input, shape index: {}]   ;;  %s479_s1 = inlined_call_operand.vmem [shape: bf16[16,128], index: 1, kind: input, shape index: {}]   ;;  %s480_s3 = inlined_call_operand.vmem [shape: f32[1,128], index: 3, kind: input, shape index: {}]   ;;  %s481_s0 = inlined_call_operand.<no memory space> [shape: f32[1,1], index: 0, kind: input, shape index: {}]   ;;  %s482_s5 = inlined_call_operand.vmem [shape: f32[1,128], index: 5, kind: input, shape index: {}]   ;;  %s483_s6 = inlined_call_operand.vmem [shape: f32[16,128], index: 6, kind: output, shape index: {}]  }
   0x1   :  { %315 = vmatprep.subr.bf16.mxu0 %v374_v0  ;;  %v357_v1 = vld [vmem:[%s477_s2] sm:$0xff]   ;;  %331 = vmatprep.mubr.msk.bf16.mxu0 %vm375_vm0, %v374_v0  ;;  %v358_v2 = vld [vmem:[%s477_s2 + $0x8] sm:$0xff]   ;;  %v359_v3 = vld [vmem:[%s477_s2 + $0x10] sm:$0xff]   ;;  %v152_v20 = vstv %s481_s0 }
   0x2   :  { %335 = vmatprep.subr.bf16.mxu1 %v374_v0  ;;  %351 = vmatprep.mubr.msk.bf16.mxu1 %vm375_vm0, %v374_v0  ;;  %v366_v4 = vld [vmem:[%s478_s4] sm:$0xff]   ;;  %v360_v5 = vld [vmem:[%s477_s2 + $0x18] sm:$0xff]   ;;  %v367_v6 = vld [vmem:[%s478_s4 + $0x8] sm:$0xff]  }
   0x3   :  { %316 = vmatpush3.bf16.msra.mxu0 %v357_v1  ;;  %336 = vmatpush3.bf16.msra.mxu1 %v366_v4  ;;  %v361_v7 = vld [vmem:[%s477_s2 + $0x20] sm:$0xff]   ;;  %v368_v8 = vld [vmem:[%s478_s4 + $0x10] sm:$0xff]   ;;  %v362_v9 = vld [vmem:[%s477_s2 + $0x28] sm:$0xff]  }
   0x4   :  { %317 = vmatprep.subr.bf16.mxu0 %v374_v0  ;;  %337 = vmatprep.subr.bf16.mxu1 %v374_v0  ;;  %v369_v10 = vld [vmem:[%s478_s4 + $0x18] sm:$0xff]   ;;  %v363_v11 = vld [vmem:[%s477_s2 + $0x30] sm:$0xff]   ;;  %v370_v12 = vld [vmem:[%s478_s4 + $0x20] sm:$0xff]  }
   0x5   :  { %v364_v13 = vld [vmem:[%s477_s2 + $0x38] sm:$0xff]   ;;  %v371_v14 = vld [vmem:[%s478_s4 + $0x28] sm:$0xff]   ;;  %v365_v15 = vld [vmem:[%s479_s1] sm:$0xff]  }
   0x6   :  { %v372_v16 = vld [vmem:[%s478_s4 + $0x30] sm:$0xff]   ;;  %v373_v17 = vld [vmem:[%s478_s4 + $0x38] sm:$0xff]   ;;  %v278_v18 = vld [vmem:[%s480_s3] ss:$0 sm:$0xff] }
   0x7   :  { %318 = vmatpush3.bf16.msra.mxu0 %v358_v2  ;;  %338 = vmatpush3.bf16.msra.mxu1 %v367_v6  ;;  %v288_v31 = vld [vmem:[%s482_s5] ss:$0 sm:$0xff] }
   0x8   :  { %319 = vmatprep.subr.bf16.mxu0 %v374_v0  ;;  %339 = vmatprep.subr.bf16.mxu1 %v374_v0 }
   0xb   :  { %320 = vmatpush3.bf16.msra.mxu0 %v359_v3  ;;  %340 = vmatpush3.bf16.msra.mxu1 %v368_v8 }
   0xc   :  { %321 = vmatprep.subr.bf16.mxu0 %v374_v0  ;;  %341 = vmatprep.subr.bf16.mxu1 %v374_v0 }
   0xf   :  { %322 = vmatpush3.bf16.msra.mxu0 %v360_v5  ;;  %342 = vmatpush3.bf16.msra.mxu1 %v369_v10 }
  0x10   :  { %323 = vmatprep.subr.bf16.mxu0 %v374_v0  ;;  %343 = vmatprep.subr.bf16.mxu1 %v374_v0 }
  0x13   :  { %324 = vmatpush3.bf16.msra.mxu0 %v361_v7  ;;  %344 = vmatpush3.bf16.msra.mxu1 %v370_v12 }
  0x14   :  { %325 = vmatprep.subr.bf16.mxu0 %v374_v0  ;;  %345 = vmatprep.subr.bf16.mxu1 %v374_v0 }
  0x17   :  { %326 = vmatpush3.bf16.msra.mxu0 %v362_v9  ;;  %346 = vmatpush3.bf16.msra.mxu1 %v371_v14 }
  0x18   :  { %327 = vmatprep.subr.bf16.mxu0 %v374_v0  ;;  %347 = vmatprep.subr.bf16.mxu1 %v374_v0 }
  0x1b   :  { %328 = vmatpush3.bf16.msra.mxu0 %v363_v11  ;;  %348 = vmatpush3.bf16.msra.mxu1 %v372_v16 }
  0x1c   :  { %329 = vmatprep.subr.bf16.mxu0 %v374_v0  ;;  %349 = vmatprep.subr.bf16.mxu1 %v374_v0 }
  0x1f   :  { %330 = vmatpush3.bf16.msra.mxu0 %v364_v13  ;;  %350 = vmatpush3.bf16.msra.mxu1 %v373_v17 }
  0x22   :  { %332 = vmatmul.mubr.bf16.vlgmr.msra.gmra.mrb[0].mxu0 %v365_v15 }
  0xf5   :  { %v142_v19 = vpop.f32.mrb[0].mxu0 }
  0xf6   :  { %v143_v21 = vadd.f32 %v278_v18, %v142_v19  ;;  %v333_v22 = vpop.f32.mrb[1].mxu0 }
  0xf7   :  { %v145_v23 = vpop.f32.mrb[2].mxu0 }
  0xf8   :  { %v153_v24 = vmul.f32 %v152_v20, %v143_v21  ;;  %v146_v25 = vadd.f32 %v278_v18, %v145_v23  ;;  %v334_v26 = vpop.f32.mrb[3].mxu0  ;;  %vm150_vm1 = vcmp.gt.f32.partialorder %v143_v21, 0.0 }
  0xfa   :  { %vm151_vm2 = vcmp.gt.f32.partialorder %v146_v25, 0.0  ;;  %v154_v27 = vmul.f32 %v152_v20, %v146_v25  ;;  %v155_v28 = vsel %vm150_vm1, %v143_v21, %v153_v24 }
  0xfc   :  { %v156_v29 = vsel %vm151_vm2, %v146_v25, %v154_v27 }
  0xfd   :  { %v157_v30 = vpack.c.bf16 %v156_v29, %v155_v28 }
  0xff   :  { %352 = vmatmul.mubr.bf16.vlgmr.msra.gmra.mrb[0].mxu1 %v157_v30 }
 0x1d2   :  { %v265_v32 = vpop.f32.mrb[0].mxu1 }
 0x1d3   :  { %v266_v33 = vadd.f32 %v288_v31, %v265_v32  ;;  %v353_v34 = vpop.f32.mrb[1].mxu1 }
 0x1d4   :  { %v268_v35 = vpop.f32.mrb[2].mxu1 }
 0x1d5   :  { %272 = vst [vmem:[%s483_s6] sm:$0xff] %v266_v33  ;;  %v269_v36 = vadd.f32 %v288_v31, %v268_v35  ;;  %v354_v37 = vpop.f32.mrb[3].mxu1 }
 0x1d7   :  { %273 = vst [vmem:[%s483_s6 + $0x8] sm:$0xff] %v269_v36 }

</bundles_post_ra>
